<compile_context>
chip_gen: v6e
topology: v6e:2x2x1
jax: 0.10.0
libtpu: 0.0.40
codegen_flags: <defaults>
</compile_context>

<pallas_src>
import jax
import jax.numpy as jnp
from jax.experimental import pallas as pl
from jax.experimental.pallas import tpu as pltpu


def _control_loss_kernel(s_ref, u_ref, q_ref, o_ref):
    """Control loss for a block of BB independent problems.

    s_ref: (2, 2*dx, BB)  f32 — s[0] = [xT; xT], s[1] = [xT_hat; x_target]
                                 stacked per column (one column per sample).
    u_ref: (du, BB*T)     f32 — controls; sample b owns columns [b*T,(b+1)*T).
    q_ref: (2, K, K)      f32 — q[0][:2dx,:2dx] = diag(alpha*R_est, beta*R_term),
                                 q[1][:du,:du]   = gamma*R_u   (scales pre-folded).
    o_ref: (1, BB)        f32 — per-sample costs.
    """
    dx2, bb = s_ref.shape[1], s_ref.shape[2]
    du, bt = u_ref.shape
    t = bt // bb  # timesteps per sample (static)

    # State differences for every sample in one shot (no per-sample loop):
    # rows 0:dx   -> xT - xT_hat      (estimation term)
    # rows dx:2dx -> xT - x_target    (terminal term)
    d = s_ref[0] - s_ref[1]                                   # (2dx, BB)
    u = u_ref[...]                                            # (du, BB*T)
    qs = q_ref[0, :dx2, :dx2]                                 # (2dx, 2dx) block-diag
    qu = q_ref[1, :du, :du]                                   # (du, du)

    # Both state quadratic forms for all samples: one MXU pass + one reduce.
    state = jnp.sum(d * jnp.dot(qs, d, preferred_element_type=jnp.float32),
                    axis=0, keepdims=True)                    # (1, BB)

    # Control quadratic forms for every (sample, timestep): one MXU pass.
    ctrl_col = jnp.sum(u * jnp.dot(qu, u, preferred_element_type=jnp.float32),
                       axis=0, keepdims=True)                 # (1, BB*T)

    # Segment-sum the per-timestep costs into per-sample costs with a tiny
    # selector matmul (built from iotas; avoids cross-lane reshapes).
    col = jax.lax.broadcasted_iota(jnp.int32, (bt, bb), 0)
    smp = jax.lax.broadcasted_iota(jnp.int32, (bt, bb), 1)
    sel = ((col >= smp * t) & (col < (smp + 1) * t)).astype(jnp.float32)
    ctrl = jnp.dot(ctrl_col, sel, preferred_element_type=jnp.float32)  # (1, BB)

    o_ref[...] = state + ctrl


def make_control_loss(alpha, beta, gamma, x_dim, u_dim,
                      R_est=None, R_terminal=None, R_u=None):
    """Mirrors ControlLoss.__init__. Returns (forward, forward_batched)."""
    R_est = jnp.eye(x_dim, dtype=jnp.float32) if R_est is None else jnp.asarray(R_est, jnp.float32)
    R_terminal = jnp.eye(x_dim, dtype=jnp.float32) if R_terminal is None else jnp.asarray(R_terminal, jnp.float32)
    R_u = jnp.eye(u_dim, dtype=jnp.float32) if R_u is None else jnp.asarray(R_u, jnp.float32)

    dx, du = x_dim, u_dim
    K = max(2 * dx, du)

    # "Module init": fold alpha/beta/gamma into the constant cost matrices and
    # pack them into a single kernel input (one DMA, reused every call).
    qpk = jnp.zeros((2, K, K), jnp.float32)
    qpk = qpk.at[0, :dx, :dx].set(alpha * R_est)
    qpk = qpk.at[0, dx:2 * dx, dx:2 * dx].set(beta * R_terminal)
    qpk = qpk.at[1, :du, :du].set(gamma * R_u)

    def forward_batched(inputs, targets):
        """xT, xT_hat: (B, dx); u: (B, du, T); targets: (B, dx) -> (B,) costs."""
        xT, xT_hat, u = inputs
        xT = jnp.asarray(xT, jnp.float32)
        xT_hat = jnp.asarray(xT_hat, jnp.float32)
        u = jnp.asarray(u, jnp.float32)
        x_tgt = jnp.asarray(targets, jnp.float32)
        B = u.shape[0]
        T = u.shape[-1]  # time on last axis (torch code's max(u.shape))

        # Pack the three state vectors of every sample into ONE array:
        # minuend slab [xT; xT] and subtrahend slab [xT_hat; x_target].
        s3 = jnp.stack([jnp.concatenate([xT, xT], axis=1).T,
                        jnp.concatenate([xT_hat, x_tgt], axis=1).T], axis=0)  # (2, 2dx, B)
        # Controls packed along the lane axis: sample b -> columns [b*T,(b+1)*T).
        uflat = jnp.transpose(u, (1, 0, 2)).reshape(du, B * T)                # (du, B*T)

        # Batch grid axis (parallel -> sharded over v7x's 2 TensorCores) when
        # B is lane-block aligned; otherwise one block covers the whole batch.
        bb = 128 if (B % 128 == 0) else B
        grid = (B // bb,)

        out = pl.pallas_call(
            _control_loss_kernel,
            out_shape=jax.ShapeDtypeStruct((1, B), jnp.float32),
            grid_spec=pltpu.PrefetchScalarGridSpec(
                num_scalar_prefetch=0,
                grid=grid,
                in_specs=[
                    pl.BlockSpec((2, 2 * dx, bb), lambda i: (0, 0, i)),
                    pl.BlockSpec((du, bb * T), lambda i: (0, i)),
                    pl.BlockSpec((2, K, K), lambda i: (0, 0, 0)),
                ],
                out_specs=pl.BlockSpec((1, bb), lambda i: (0, i)),
            ),
            compiler_params=pltpu.CompilerParams(
                dimension_semantics=("parallel",)),
        )(s3, uflat, qpk)
        return out[0]                                                         # (B,)

    def forward(inputs, targets):
        """Original module API: xT, xT_hat (dx,)/(dx,1); u (du, T); -> scalar."""
        xT, xT_hat, u = inputs
        xT = jnp.asarray(xT, jnp.float32).reshape(1, -1)
        xT_hat = jnp.asarray(xT_hat, jnp.float32).reshape(1, -1)
        x_tgt = jnp.asarray(targets, jnp.float32).reshape(1, -1)
        u = jnp.asarray(u, jnp.float32)[None]
        return forward_batched((xT, xT_hat, u), x_tgt)[0]

    return forward, forward_batched


def control_loss_ref(alpha, beta, gamma, R_est, R_terminal, R_u,
                     xT, xT_hat, u, x_target):
    """Plain-JAX reference mirroring the PyTorch forward loop."""
    d_est = xT.reshape(-1) - xT_hat.reshape(-1)
    est = d_est @ R_est @ d_est
    d_term = xT.reshape(-1) - x_target.reshape(-1)
    term = d_term @ R_terminal @ d_term
    T = u.shape[-1]
    ctrl = 0.0
    for t in range(T):
        ctrl = ctrl + u[:, t] @ R_u @ u[:, t]
    return alpha * est + beta * term + gamma * ctrl


if __name__ == "__main__":
    dx, du, T, B = 8, 4, 8, 4
    alpha, beta, gamma = 0.5, 2.0, 0.1

    key = jax.random.PRNGKey(0)
    k1, k2, k3, k4, k5, k6, k7 = jax.random.split(key, 7)

    # Deterministic symmetric PSD cost matrices (module takes them at init).
    A1 = jax.random.normal(k1, (dx, dx), dtype=jnp.float32)
    A2 = jax.random.normal(k2, (dx, dx), dtype=jnp.float32)
    A3 = jax.random.normal(k3, (du, du), dtype=jnp.float32)
    R_est = A1 @ A1.T / dx + jnp.eye(dx, dtype=jnp.float32)
    R_terminal = A2 @ A2.T / dx + jnp.eye(dx, dtype=jnp.float32)
    R_u = A3 @ A3.T / du + 0.1 * jnp.eye(du, dtype=jnp.float32)

    # Deterministic trajectory data (a small batch of independent problems).
    xT = jax.random.normal(k4, (B, dx), dtype=jnp.float32)
    xT_hat = jax.random.normal(k5, (B, dx), dtype=jnp.float32)
    x_target = jax.random.normal(k6, (B, dx), dtype=jnp.float32)
    u = jax.random.normal(k7, (B, du, T), dtype=jnp.float32)

    forward, forward_batched = make_control_loss(
        alpha, beta, gamma, dx, du, R_est, R_terminal, R_u)

    # Batched path: B problems, one pallas_call.
    costs = jax.block_until_ready(forward_batched((xT, xT_hat, u), x_target))
    refs = jnp.stack([
        control_loss_ref(alpha, beta, gamma, R_est, R_terminal, R_u,
                         xT[b], xT_hat[b], u[b], x_target[b])
        for b in range(B)])
    assert jnp.allclose(costs, refs, rtol=1e-3, atol=1e-3), (costs, refs)

    # Module-style single-problem path (same kernel, B = 1).
    c0 = jax.block_until_ready(forward((xT[0], xT_hat[0], u[0]), x_target[0]))
    assert jnp.allclose(c0, refs[0], rtol=1e-3, atol=1e-3), (c0, refs[0])

    print("KERNEL_OK")
</pallas_src>

<mosaic_0001>
module attributes {stable_mosaic.version = 11 : i64} {
  func.func @_control_loss_kernel(%arg0: i32, %arg1: memref<2x16x4xf32, #tpu.memory_space<vmem>>, %arg2: memref<4x32xf32, #tpu.memory_space<vmem>>, %arg3: memref<2x16x16xf32, #tpu.memory_space<vmem>>, %arg4: memref<1x4xf32, #tpu.memory_space<vmem>>) attributes {dimension_semantics = [#tpu.dimension_semantics<parallel>], iteration_bounds = array<i64: 1>, scalar_prefetch = 0 : i64, scratch_operands = 0 : i64, tpu.core_type = #tpu.core_type<tc>, window_params = [{transform_indices = @transform_0, window_bounds = array<i64: 2, 16, 4>}, {transform_indices = @transform_1, window_bounds = array<i64: 4, 32>}, {pipeline_mode = #tpu.pipeline_mode<synchronous>, transform_indices = @transform_2, window_bounds = array<i64: 2, 16, 16>}, {transform_indices = @transform_3, window_bounds = array<i64: 1, 4>}]} {
    %c0 = arith.constant 0 : index
    %c0_0 = arith.constant 0 : index
    %c0_1 = arith.constant 0 : index
    %0 = vector.load %arg1[%c0, %c0_0, %c0_1] : memref<2x16x4xf32, #tpu.memory_space<vmem>>, vector<1x16x4xf32>
    %1 = vector.shape_cast %0 : vector<1x16x4xf32> to vector<16x4xf32>
    %c1 = arith.constant 1 : index
    %c0_2 = arith.constant 0 : index
    %c0_3 = arith.constant 0 : index
    %2 = vector.load %arg1[%c1, %c0_2, %c0_3] : memref<2x16x4xf32, #tpu.memory_space<vmem>>, vector<1x16x4xf32>
    %3 = vector.shape_cast %2 : vector<1x16x4xf32> to vector<16x4xf32>
    %4 = arith.subf %1, %3 : vector<16x4xf32>
    %c0_4 = arith.constant 0 : index
    %c0_5 = arith.constant 0 : index
    %5 = vector.load %arg2[%c0_4, %c0_5] : memref<4x32xf32, #tpu.memory_space<vmem>>, vector<4x32xf32>
    %c0_6 = arith.constant 0 : index
    %c0_7 = arith.constant 0 : index
    %c0_8 = arith.constant 0 : index
    %6 = vector.load %arg3[%c0_6, %c0_7, %c0_8] : memref<2x16x16xf32, #tpu.memory_space<vmem>>, vector<1x16x16xf32>
    %7 = vector.shape_cast %6 : vector<1x16x16xf32> to vector<16x16xf32>
    %c1_9 = arith.constant 1 : index
    %c0_10 = arith.constant 0 : index
    %c0_11 = arith.constant 0 : index
    %8 = vector.load %arg3[%c1_9, %c0_10, %c0_11] : memref<2x16x16xf32, #tpu.memory_space<vmem>>, vector<1x4x4xf32>
    %9 = vector.shape_cast %8 : vector<1x4x4xf32> to vector<4x4xf32>
    %cst = arith.constant dense<0.000000e+00> : vector<16x4xf32>
    %10 = tpu.matmul %7, %4, %cst {dimension_numbers = #tpu.dot_dimension_numbers<[1], [0], [0], [1], [0, 0, 1, 1], [], []>} : vector<16x16xf32>, vector<16x4xf32>, vector<16x4xf32> -> vector<16x4xf32>
    %11 = arith.mulf %4, %10 : vector<16x4xf32>
    %cst_12 = arith.constant dense<0.000000e+00> : vector<4xf32>
    %12 = vector.multi_reduction <add>, %11, %cst_12 [0] : vector<16x4xf32> to vector<4xf32>
    %13 = vector.shape_cast %12 : vector<4xf32> to vector<1x4xf32>
    %cst_13 = arith.constant dense<0.000000e+00> : vector<4x32xf32>
    %14 = tpu.matmul %9, %5, %cst_13 {dimension_numbers = #tpu.dot_dimension_numbers<[1], [0], [0], [1], [0, 0, 1, 1], [], []>} : vector<4x4xf32>, vector<4x32xf32>, vector<4x32xf32> -> vector<4x32xf32>
    %15 = arith.mulf %5, %14 : vector<4x32xf32>
    %cst_14 = arith.constant dense<0.000000e+00> : vector<32xf32>
    %16 = vector.multi_reduction <add>, %15, %cst_14 [0] : vector<4x32xf32> to vector<32xf32>
    %17 = vector.shape_cast %16 : vector<32xf32> to vector<1x32xf32>
    %18 = tpu.iota {dimensions = array<i32: 0>} : vector<32x4xi32>
    %19 = tpu.iota {dimensions = array<i32: 1>} : vector<32x4xi32>
    %c8_i32 = arith.constant 8 : i32
    %20 = vector.broadcast %c8_i32 : i32 to vector<32x4xi32>
    %21 = arith.muli %19, %20 : vector<32x4xi32>
    %22 = arith.cmpi sge, %18, %21 : vector<32x4xi32>
    %c1_i32 = arith.constant 1 : i32
    %23 = vector.broadcast %c1_i32 : i32 to vector<32x4xi32>
    %24 = arith.addi %19, %23 : vector<32x4xi32>
    %c8_i32_15 = arith.constant 8 : i32
    %25 = vector.broadcast %c8_i32_15 : i32 to vector<32x4xi32>
    %26 = arith.muli %24, %25 : vector<32x4xi32>
    %27 = arith.cmpi slt, %18, %26 : vector<32x4xi32>
    %28 = arith.andi %22, %27 : vector<32x4xi1>
    %29 = arith.extui %28 : vector<32x4xi1> to vector<32x4xi32>
    %30 = arith.sitofp %29 : vector<32x4xi32> to vector<32x4xf32>
    %cst_16 = arith.constant dense<0.000000e+00> : vector<1x4xf32>
    %31 = tpu.matmul %17, %30, %cst_16 {dimension_numbers = #tpu.dot_dimension_numbers<[1], [0], [0], [1], [0, 0, 1, 1], [], []>} : vector<1x32xf32>, vector<32x4xf32>, vector<1x4xf32> -> vector<1x4xf32>
    %32 = arith.addf %13, %31 : vector<1x4xf32>
    %c0_17 = arith.constant 0 : index
    %c0_18 = arith.constant 0 : index
    %33 = vector.load %arg4[%c0_17, %c0_18] : memref<1x4xf32, #tpu.memory_space<vmem>>, vector<1x4xf32>
    tpu.vector_store %arg4[%c0_17, %c0_18], %32 {strides = array<i32>} : memref<1x4xf32, #tpu.memory_space<vmem>>, vector<1x4xf32>,
    return
  }
  func.func @transform_0(%arg0: i32) -> (i32, i32, i32) {
    %c0_i32 = arith.constant 0 : i32
    %c0_i32_0 = arith.constant 0 : i32
    %c0_i32_1 = arith.constant 0 : i32
    return %c0_i32, %c0_i32_0, %arg0 : i32, i32, i32
  }
  func.func @transform_1(%arg0: i32) -> (i32, i32) {
    %c0_i32 = arith.constant 0 : i32
    %c0_i32_0 = arith.constant 0 : i32
    return %c0_i32, %arg0 : i32, i32
  }
  func.func @transform_2(%arg0: i32) -> (i32, i32, i32) {
    %c0_i32 = arith.constant 0 : i32
    %c0_i32_0 = arith.constant 0 : i32
    %c0_i32_1 = arith.constant 0 : i32
    %c0_i32_2 = arith.constant 0 : i32
    return %c0_i32, %c0_i32_0, %c0_i32_1 : i32, i32, i32
  }
  func.func @transform_3(%arg0: i32) -> (i32, i32) {
    %c0_i32 = arith.constant 0 : i32
    %c0_i32_0 = arith.constant 0 : i32
    return %c0_i32, %arg0 : i32, i32
  }
}

</mosaic_0001>

<bundles_post_ra>
// kernel: tpu_custom_call.1
= control target key start
LH: loop header
LB: loop body
LE: loop exit
PB: predicated region body
PF: predicated region fallthrough
CT: control target
= control target key end

     0   :  { %vm27_vm0 = vcmask 130048   ;;  %v404_v6 = vmov 0.0   ;;  %vm405_vm1 = vmmov 0   ;;  %s460_s0 = inlined_call_operand.vmem [shape: f32[2,16,4], index: 0, kind: input, shape index: {}]   ;;  %s461_s1 = inlined_call_operand.vmem [shape: f32[4,32], index: 1, kind: input, shape index: {}]   ;;  %s462_s2 = inlined_call_operand.vmem [shape: f32[2,16,16], index: 2, kind: input, shape index: {}]   ;;  %s463_s3 = inlined_call_operand.hbm [shape: f32[1,4], index: 3, kind: output, shape index: {}]  }
   0x1   :  { %v16_v0 = vld [vmem:[%s460_s0 + $0x8] sm:$0xff]  ;;  %v329_v1 = vld [vmem:[%s460_s0 + $0x18] sm:$0xff]  ;;  %v15_v2 = vld [vmem:[%s460_s0] sm:$0xff]  ;;  %367 = vmatprep.subr.mxu1 %v404_v6  ;;  %375 = vmatprep.mubr.msk.f32.mxu1 %vm405_vm1, %v404_v6 }
   0x2   :  { %v21_v3 = vsub.f32 %v16_v0, %v329_v1  ;;  %v328_v4 = vld [vmem:[%s460_s0 + $0x10] sm:$0xff]  ;;  %v23_v5 = vld [vmem:[%s462_s2] sm:$0xff] }
   0x3   :  { %v20_v7 = vsub.f32 %v15_v2, %v328_v4  ;;  %359 = vmatprep.mubr.msk.f32.mxu0 %vm27_vm0, %v23_v5 }
   0x4   :  { %8 = vsyncpa [#allocation3], 0  ;;  %355 = vmatprep.subr.mxu0 %v21_v3  ;;  %v24_v8 = vld [vmem:[%s462_s2 + $0x8] sm:$0xff]  ;;  %v22_v9 = vld [vmem:[%s461_s1] sm:$0xf]  ;;  %vm124_vm2 = vcmask 1043456   ;;  %v207_v11 = vlaneseq }
   0x5   :  { %356 = vmatpush3.msra.mxu0 %v21_v3  ;;  %v330_v10 = vld [vmem:[%s462_s2 + $0x10] sm:$0xf]  ;;  %vm111_vm3 = vcmask 31744   ;;  %v406_v19 = vmov 1.0   ;;  %s407_s1 = smov [#allocation2]  }
   0x6   :  { %357 = vmatprep.subr.mxu0 %v20_v7  ;;  %v213_v12 = vand.u32 127, %v207_v11  ;;  %v208_v13 = vshrl.u32 %v207_v11, 7  ;;  %s320_s2 = sshll.u32 %s407_s1, 4  ;;  %s321_s2 = int_to_ptr.vmem [resolvable:$true] %s320_s2 }
   0x7   :  { %358 = vmatpush3.msra.mxu0 %v20_v7  ;;  %s382_s27 = scalar_lea.vmem %s321_s2, 16  ;;  %s386_s28 = scalar_lea.vmem %s321_s2, 32 }
   0x8   :  { %360 = vmatmul.mubr.msk.f32.vlgmr.msra.gmra.mxu0 %vm27_vm0, %v24_v8  ;;  %362 = vmatprep.subr.mxu0 %v404_v6  ;;  %v219_v14 = vadd.s32 1, %v213_v12  ;;  %v211_v15 = vadd.s32 24, %v208_v13  ;;  %v214_v16 = vmul.u32 8, %v213_v12  ;;  %v210_v18 = vadd.s32 16, %v208_v13  ;;  %p383_p0 = scmp.ne.s32.totalorder %s321_s2, %s382_s27  ;;  %p387_p1 = scmp.lt.s32.totalorder %s321_s2, %s321_s2 }
   0x9   :  { %363 = vmatpush3.msk.msra.mxu0 %vm124_vm2, %v22_v9  ;;  %364 = vmatprep.mubr.msk.f32.mxu0 %vm405_vm1, %v404_v6  ;;  %v209_v20 = vadd.s32 8, %v208_v13  ;;  %vm199_vm0 = vcmask 257024   ;;  %vm237_vm1 = vcmask 261120   ;;  %vm312_vm2 = vcmask 24576   ;;  %p388_p2 = scmp.lt.s32.totalorder %s386_s28, %s382_s27 }
   0xa   :  { %v220_v17 = vmul.u32 8, %v219_v14  ;;  %vm218_vm4 = vcmp.ge.s32.totalorder %v211_v15, %v214_v16  ;;  %vm217_vm7 = vcmp.ge.s32.totalorder %v210_v18, %v214_v16  ;;  %vm215_vm13 = vcmp.ge.s32.totalorder %v208_v13, %v214_v16 }
   0xb   :  { %vm216_vm10 = vcmp.ge.s32.totalorder %v209_v20, %v214_v16  ;;  %p389_p3 = por %p388_p2, %p387_p1 }
   0xc   :  { %365 = vmatmul.mubr.msk.f32.vlgmr.msra.gmra.mxu0 %vm111_vm3, %v330_v10  ;;  %vm224_vm5 = vcmp.lt.s32.totalorder %v211_v15, %v220_v17  ;;  %vm223_vm8 = vcmp.lt.s32.totalorder %v210_v18, %v220_v17  ;;  %vm222_vm11 = vcmp.lt.s32.totalorder %v209_v20, %v220_v17  ;;  %vm221_vm14 = vcmp.lt.s32.totalorder %v208_v13, %v220_v17 }
   0xd   :  { %vm228_vm6 = vmand %vm218_vm4, %vm224_vm5  ;;  %p390_p4 = pnand %p389_p3, %p383_p0 }
   0xe   :  { %368 = vmatpush3.msk.msra.mxu1 %vm228_vm6, %v406_v19  ;;  %vm227_vm9 = vmand %vm217_vm7, %vm223_vm8 }
   0xf   :  { %369 = vmatprep.subr.mxu1 %v404_v6  ;;  %vm226_vm12 = vmand %vm216_vm10, %vm222_vm11 }
  0x10   :  { %370 = vmatpush3.msk.msra.mxu1 %vm227_vm9, %v406_v19  ;;  %vm225_vm15 = vmand %vm215_vm13, %vm221_vm14 }
  0x11   :  { %371 = vmatprep.subr.mxu1 %v404_v6 }
  0x12   :  { %372 = vmatpush3.msk.msra.mxu1 %vm226_vm12, %v406_v19 }
  0x13   :  { %373 = vmatprep.subr.mxu1 %v404_v6 }
  0x14   :  { %374 = vmatpush3.msk.msra.mxu1 %vm225_vm15, %v406_v19 }
  0xc8   :  { %v361_v21 = vpop.f32.mrf.mxu0 }
  0xc9   :  { %v110_v22 = vmul.f32 %v361_v21, %v21_v3 }
  0xca   :  { %v100_v23 = vpop.f32.mrf.mxu0 }
  0xcb   :  { %v109_v24 = vmul.f32 %v100_v23, %v20_v7  ;;  %v113_v26 = vsel %vm111_vm3, %v110_v22, 0.0 }
  0xcc   :  { %v194_v25 = vpop.f32.mrf.mxu0 }
  0xcd   :  { %v112_v27 = vsel %vm111_vm3, %v109_v24, 0.0  ;;  %v198_v28 = vmul.f32 %v194_v25, %v22_v9 }
  0xce   :  { %v114_v29 = vadd.f32 %v113_v26, %v112_v27  ;;  %v366_v30 = vpop.f32.mrf.mxu0 }
  0xcf   :  { %v200_v31 = vsel %vm199_vm0, %v198_v28, 0.0 }
  0xd0   :  { %v201_v32 = vrot.slane %v200_v31, 4  ;;  %v115_v38 = vrot.slane %v114_v29, 4 }
  0xd2   :  { %v202_v33 = vadd.f32 %v201_v32, %v200_v31  ;;  %v116_v39 = vadd.f32 %v115_v38, %v114_v29 }
  0xd4   :  { %v203_v34 = vrot.slane %v202_v33, 2  ;;  %v117_v40 = vrot.slane %v116_v39, 2 }
  0xd6   :  { %v204_v35 = vadd.f32 %v203_v34, %v202_v33  ;;  %v118_v41 = vadd.f32 %v117_v40, %v116_v39 }
  0xd8   :  { %v205_v36 = vrot.slane %v204_v35, 1  ;;  %v119_v42 = vrot.slane %v118_v41, 1 }
  0xda   :  { %v206_v37 = vadd.f32 %v205_v36, %v204_v35  ;;  %v120_v43 = vadd.f32 %v119_v42, %v118_v41 }
  0xdc   :  { %376 = vmatmul.mubr.msk.f32.vlgmr.msra.gmra.mxu1 %vm237_vm1, %v206_v37 }
 0x19c   :  { %v307_v44 = vpop.f32.mrf.mxu1 }
 0x19d   :  { %v311_v45 = vadd.f32 %v307_v44, %v120_v43 }
 0x19e   :  { %v377_v46 = vpop.f32.mrf.mxu1 }
 0x19f   :  { %313 = vst.msk [vmem:[#allocation2] sm:$0x1] %vm312_vm2, %v311_v45 }
 0x1a0   :  { %393 = shalt.err (!%p390_p4)
}
 0x1a1   :  { %323 = dma.vmem_to_hbm [thread:$0]  %s321_s2, 16, %s463_s3, [#allocation3]  }
 0x1a2   :  { %402 = dma.done.wait [#allocation3], 16  }
 0x1a3   :  { %403 = vsyncadd [#allocation3], 4294967280 }
 0x1a4   :  { %327 = vsyncpa [#allocation3], 1 }

</bundles_post_ra>
